<compile_context>
chip_gen: v5e
topology: v5e:2x2
jax: 0.10.0
libtpu: 0.0.40
codegen_flags: <defaults>
</compile_context>

<pallas_src>
import functools

import jax
import jax.numpy as jnp
from jax import lax
from jax.experimental import pallas as pl
from jax.experimental.pallas import tpu as pltpu

LEAK = 0.1            # LeakyReLU negative slope of the edge_only MLP
NODE_IN = 1           # x = energy scalar (transform_input == False)
EDGE_IN = 12          # [pos_i(3), pos_j(3), disp(3), |disp|(1), e_i, e_j]
MLP_DIMS = (2 * NODE_IN + EDGE_IN, 64, 64, 32, 16, 8, 2)

# (sublane offset in the packed weight slab, out_dim, in_dim) for hidden layers 2..5.
LAYER_SLICES = ((0, 64, 64), (64, 32, 64), (96, 16, 32), (112, 8, 16))
WSLAB_ROWS = 128


# ----------------------------------------------------------------------------- kernel


def edge_mlp_kernel(slab_ref, wab_ref, wslab_ref, w6t_ref, f_ref, out_ref, *, act_dtype):
    """One tile of T edges. Edges on lanes, feature channels on sublanes.

    slab rows: [x_i, y_i, z_i, e_i, x_j, y_j, z_j, e_j]   (f32, [8, T])
    """
    s = slab_ref[...]                                     # [8, T] f32
    f = f_ref[...]                                        # [64, 8] f32: [wd|b1..b5|b6|0]
    bf16 = jnp.bfloat16

    # |pos_j - pos_i|: rows 4:7 minus rows 0:3 (row 3/7 = energy, excluded).
    d = s[4:8, :] - s[0:4, :]                             # [4, T]
    dd = d * d
    dist = jnp.sqrt(jnp.sum(dd[0:3, :], axis=0, keepdims=True))    # [1, T] f32

    # layer 1: all linear edge features folded into the single [64, 8] weight; only the
    # nonlinear |disp| term is added separately. f32 accumulation + bias, one cast.
    h = (jnp.dot(wab_ref[...], s.astype(bf16), preferred_element_type=jnp.float32)
         + f[:, 0:1] * dist + f[:, 1:2])                  # [64, T] f32
    h = jnp.maximum(h, LEAK * h).astype(act_dtype)

    # layers 2..5 at their true widths (64, 32, 16, 8); bias + LeakyReLU in act dtype.
    for i, (r0, dout, din) in enumerate(LAYER_SLICES):
        w = wslab_ref[r0:r0 + dout, 0:din]                # bf16, static slice
        b = f[0:dout, 2 + i:3 + i].astype(act_dtype)      # [dout, 1]
        a = jnp.dot(w, h.astype(bf16), preferred_element_type=jnp.float32)
        h = a.astype(act_dtype) + b
        h = jnp.maximum(h, LEAK * h)

    # layer 6: [2, 8] @ [8, T] -> lane-dense [2, T] f32 output (unmasked stores).
    out_ref[...] = (jnp.dot(w6t_ref[...], h.astype(bf16),
                            preferred_element_type=jnp.float32) + f[0:2, 6:7])


# ------------------------------------------------------------------- params & folding


def init_edge_mlp_params(key):
    """Deterministic init mimicking torch.nn.Linear default (uniform +-1/sqrt(fan_in))."""
    params = []
    for d_in, d_out in zip(MLP_DIMS[:-1], MLP_DIMS[1:]):
        key, kw, kb = jax.random.split(key, 3)
        bound = 1.0 / jnp.sqrt(jnp.float32(d_in))
        w = jax.random.uniform(kw, (d_in, d_out), jnp.float32, -bound, bound)
        b = jax.random.uniform(kb, (1, d_out), jnp.float32, -bound, bound)
        params += [w, b]
    return params


def fold_and_pack_params(params):
    """Fold the linear edge features into W1 and pack everything into 4 blocks.

    Original 14-channel MLP input (per edge):
        [e_i, e_j, pos_i(3), pos_j(3), disp(3) = pos_j - pos_i, dist, e_i, e_j]
    Kernel slab rows: [x_i, y_i, z_i, e_i, x_j, y_j, z_j, e_j], so
        h1 = Wab @ slab + wd * dist + b1.
    """
    w1, b1, w2, b2, w3, b3, w4, b4, w5, b5, w6, b6 = params
    f32 = jnp.float32

    wab = jnp.zeros((8, 64), f32)
    wab = wab.at[0:3].set(w1[2:5] - w1[8:11])          # pos_i   (also -disp)
    wab = wab.at[3].set(w1[0] + w1[12])                # e_i     (appears twice)
    wab = wab.at[4:7].set(w1[5:8] + w1[8:11])          # pos_j   (also +disp)
    wab = wab.at[7].set(w1[1] + w1[13])                # e_j     (appears twice)
    wab_t = wab.T                                      # [64, 8]

    # Layers 2..5 sublane-stacked in one slab at 16-aligned offsets, true widths.
    wslab = jnp.zeros((WSLAB_ROWS, 64), f32)
    wslab = wslab.at[0:64, 0:64].set(w2.T)             # [64, 64]
    wslab = wslab.at[64:96, 0:64].set(w3.T)            # [32, 64]
    wslab = wslab.at[96:112, 0:32].set(w4.T)           # [16, 32]
    wslab = wslab.at[112:120, 0:16].set(w5.T)          # [ 8, 16]

    w6t = w6.T                                         # [2, 8]

    def col(v):                                        # vector -> [64, 1] column
        v = jnp.asarray(v).reshape(-1)
        return jnp.zeros((64, 1), f32).at[:v.shape[0], 0].set(v)

    fslab = jnp.concatenate(
        [col(w1[11]), col(b1), col(b2), col(b3), col(b4), col(b5), col(b6),
         jnp.zeros((64, 1), f32)], axis=1)             # [64, 8] f32

    bf16 = jnp.bfloat16
    return wab_t.astype(bf16), wslab.astype(bf16), w6t.astype(bf16), fslab


# ------------------------------------------------------------------------ pallas call


def _hidden_act_dtype():
    """bf16 elementwise work on chips with a bf16 VPU (v6e/v7x); f32 on older gens."""
    try:
        kind = jax.devices()[0].device_kind.lower()
    except Exception:
        return jnp.bfloat16
    if any(v in kind for v in ("v2", "v3", "v4", "v5")):
        return jnp.float32
    return jnp.bfloat16


def _edge_tiling(num_edges, cap=2048):
    """Large edge tiles amortize the ~0.35us per-grid-step overhead; keep the tile
    count even (>=2 when possible) so the 'parallel' axis splits evenly across the
    two TensorCores of a v7x chip."""
    half = pl.cdiv(num_edges, 2)
    tile = int(min(cap, max(128, pl.cdiv(half, 128) * 128)))
    n_tiles = int(pl.cdiv(num_edges, tile))
    if n_tiles > 1 and n_tiles % 2 == 1:
        n_tiles += 1
    return tile, n_tiles * tile


def run_edge_predictor(feat4, edge_index, packed, act_dtype):
    """feat4: [4, N] rows [x, y, z, energy]; edge_index: [2, E] int32 -> preds [E, 2]."""
    E = edge_index.shape[1]
    tile_e, E_pad = _edge_tiling(E)

    # Pad the *indices* (fill with node 0) before the gather so it writes the padded
    # [8, E_pad] slab directly -- no extra HBM pad pass over the gathered data.
    idx = jnp.pad(edge_index, ((0, 0), (0, E_pad - E)))
    slab = jnp.concatenate([jnp.take(feat4, idx[0], axis=1),
                            jnp.take(feat4, idx[1], axis=1)], axis=0).astype(jnp.float32)

    wab, wslab, w6t, fslab = packed

    def const_spec(p):
        return pl.BlockSpec(p.shape, lambda i: (0, 0))

    out_t = pl.pallas_call(
        functools.partial(edge_mlp_kernel, act_dtype=act_dtype),
        out_shape=jax.ShapeDtypeStruct((2, E_pad), jnp.float32),
        grid=(E_pad // tile_e,),
        in_specs=[pl.BlockSpec((8, tile_e), lambda i: (0, i)),
                  const_spec(wab), const_spec(wslab), const_spec(w6t), const_spec(fslab)],
        out_specs=pl.BlockSpec((2, tile_e), lambda i: (0, i)),
        compiler_params=pltpu.CompilerParams(dimension_semantics=("parallel",)),
    )(slab, wab, wslab, w6t, fslab)
    # Padded tail lanes hold finite garbage; slice them off before anyone reads them.
    return out_t[:, :E].T                              # [E, 2]


# --------------------------------------------------------------------- graph building


def build_knn_edges(voxels, batch, k=3):
    """Deterministic, batch-aware stand-in for the Delaunay/Freudenthal 1-skeleton."""
    # TODO(synk): DelaunayLayer / Freudenthal flag complex (union_find) has no Pallas/JAX
    #             equivalent; a deterministic per-event k-NN graph is used instead.
    # TODO(synk): for large N, tile this distance computation (or move it into its own
    #             Pallas distance/top-k kernel) instead of the dense N x N matrix.
    n = voxels.shape[0]
    d2 = jnp.sum((voxels[:, None, :] - voxels[None, :, :]) ** 2, axis=-1)
    invalid = jnp.eye(n, dtype=bool) | (batch[:, None] != batch[None, :])
    score = jnp.where(invalid, -jnp.inf, -d2)
    vals, nbrs = lax.top_k(score, k)                              # deterministic ties
    src = jnp.repeat(jnp.arange(n, dtype=jnp.int32), k)           # [n*k]
    dst = nbrs.reshape(-1).astype(jnp.int32)                      # [n*k]
    # Events with <= k voxels would otherwise pick masked (cross-event) candidates;
    # degrade those to self-edges instead.
    dst = jnp.where(jnp.isfinite(vals).reshape(-1), dst, src)
    return jnp.stack([src, dst], axis=0)                          # [2, E]


# --------------------------------------------------------------------------- forward


def mst_edge_model_forward(data0, data1, params, k=3):
    """Mirrors MSTEdgeModel.forward (em_only=False, transform_input=False, reg_ph1=0)."""
    del data1                                      # em_only = False: no 5-types selection
    voxels = data0[:, :3]
    xbatch = data0[:, 3]
    energy = data0[:, -1]                          # x = energy (transform_input == False)

    edge_index = build_knn_edges(voxels, xbatch, k=k)             # [2, E]

    # Endpoint features feature-major (edges will live on the lane axis).
    feat4 = jnp.concatenate([voxels.T, energy[None, :]], axis=0)  # [4, N] rows [x,y,z,e]

    packed = fold_and_pack_params(params)
    edge_pred = run_edge_predictor(feat4, edge_index, packed, _hidden_act_dtype())
    return {'complex': None,   # TODO(synk): simplicial complex object (topology lib only)
            'edges': edge_index,
            'edge_pred': edge_pred}


# -------------------------------------------------------------------------- reference


def edge_mlp_reference(data0, edge_index, params):
    """Exact-f32, unfolded reference of the edge features + edge_only MLP."""
    src = jnp.take(data0, edge_index[0], axis=0)
    dst = jnp.take(data0, edge_index[1], axis=0)
    pos_i, e_i = src[:, 0:3], src[:, 4:5]
    pos_j, e_j = dst[:, 0:3], dst[:, 4:5]
    disp = pos_j - pos_i
    dist = jnp.sqrt(jnp.sum(disp * disp, axis=-1, keepdims=True))
    h = jnp.concatenate([e_i, e_j, pos_i, pos_j, disp, dist, e_i, e_j], axis=-1)
    for l in range(6):
        w, b = params[2 * l], params[2 * l + 1]
        h = h @ w + b
        if l < 5:
            h = jnp.where(h > 0, h, LEAK * h)
    return h


# -------------------------------------------------------------------------------- main


if __name__ == "__main__":
    key = jax.random.PRNGKey(0)
    k_pos, k_eng, k_lab, k_par = jax.random.split(key, 4)

    N = 64  # voxels, 2 events
    voxels = jax.random.uniform(k_pos, (N, 3), jnp.float32, 0.0, 16.0)
    batch_id = jnp.concatenate([jnp.zeros((N // 2, 1), jnp.float32),
                                jnp.ones((N - N // 2, 1), jnp.float32)], axis=0)
    energy = jax.random.uniform(k_eng, (N, 1), jnp.float32, 0.1, 2.0)
    data0 = jnp.concatenate([voxels, batch_id, energy], axis=1)             # [N, 5]
    data1 = jax.random.randint(k_lab, (N, 5), 0, 5).astype(jnp.float32)     # 5-types labels

    params = init_edge_mlp_params(k_par)

    out = jax.jit(mst_edge_model_forward)(data0, data1, params)
    edge_pred = jax.block_until_ready(out['edge_pred'])

    E = out['edges'].shape[1]
    assert edge_pred.shape == (E, 2) and edge_pred.dtype == jnp.float32
    assert bool(jnp.all(jnp.isfinite(edge_pred)))

    # Loose check against the exact-f32 unfolded reference (the kernel uses bf16 MXU
    # operands and, on v6e/v7x, bf16 hidden activations, so some rounding is expected).
    ref = edge_mlp_reference(data0, out['edges'], params)
    err = float(jnp.max(jnp.abs(edge_pred - ref)))
    tol = 0.35 + 0.08 * float(jnp.max(jnp.abs(ref)))
    assert err < tol, f"max |pallas - ref| = {err} (tol {tol})"

    print("KERNEL_OK")
</pallas_src>

<mosaic_0001>
module attributes {stable_mosaic.version = 11 : i64} {
  func.func @edge_mlp_kernel(%arg0: i32, %arg1: memref<8x128xf32, #tpu.memory_space<vmem>>, %arg2: memref<64x8xbf16, #tpu.memory_space<vmem>>, %arg3: memref<128x64xbf16, #tpu.memory_space<vmem>>, %arg4: memref<2x8xbf16, #tpu.memory_space<vmem>>, %arg5: memref<64x8xf32, #tpu.memory_space<vmem>>, %arg6: memref<2x128xf32, #tpu.memory_space<vmem>>) attributes {dimension_semantics = [#tpu.dimension_semantics<parallel>], iteration_bounds = array<i64: 2>, scalar_prefetch = 0 : i64, scratch_operands = 0 : i64, tpu.core_type = #tpu.core_type<tc>, window_params = [{transform_indices = @transform_0, window_bounds = array<i64: 8, 128>}, {pipeline_mode = #tpu.pipeline_mode<synchronous>, transform_indices = @transform_1, window_bounds = array<i64: 64, 8>}, {pipeline_mode = #tpu.pipeline_mode<synchronous>, transform_indices = @transform_2, window_bounds = array<i64: 128, 64>}, {pipeline_mode = #tpu.pipeline_mode<synchronous>, transform_indices = @transform_3, window_bounds = array<i64: 2, 8>}, {pipeline_mode = #tpu.pipeline_mode<synchronous>, transform_indices = @transform_4, window_bounds = array<i64: 64, 8>}, {transform_indices = @transform_5, window_bounds = array<i64: 2, 128>}]} {
    %c0 = arith.constant 0 : index
    %c0_0 = arith.constant 0 : index
    %0 = vector.load %arg1[%c0, %c0_0] : memref<8x128xf32, #tpu.memory_space<vmem>>, vector<8x128xf32>
    %c0_1 = arith.constant 0 : index
    %c0_2 = arith.constant 0 : index
    %1 = vector.load %arg5[%c0_1, %c0_2] : memref<64x8xf32, #tpu.memory_space<vmem>>, vector<64x8xf32>
    %2 = vector.extract_strided_slice %0 {offsets = [4, 0], sizes = [4, 128], strides = [1, 1]} : vector<8x128xf32> to vector<4x128xf32>
    %3 = vector.extract_strided_slice %0 {offsets = [0, 0], sizes = [4, 128], strides = [1, 1]} : vector<8x128xf32> to vector<4x128xf32>
    %4 = arith.subf %2, %3 : vector<4x128xf32>
    %5 = arith.mulf %4, %4 : vector<4x128xf32>
    %6 = vector.extract_strided_slice %5 {offsets = [0, 0], sizes = [3, 128], strides = [1, 1]} : vector<4x128xf32> to vector<3x128xf32>
    %cst = arith.constant dense<0.000000e+00> : vector<128xf32>
    %7 = vector.multi_reduction <add>, %6, %cst [0] : vector<3x128xf32> to vector<128xf32>
    %8 = vector.shape_cast %7 : vector<128xf32> to vector<1x128xf32>
    %9 = math.sqrt %8 : vector<1x128xf32>
    %c0_3 = arith.constant 0 : index
    %c0_4 = arith.constant 0 : index
    %10 = vector.load %arg2[%c0_3, %c0_4] : memref<64x8xbf16, #tpu.memory_space<vmem>>, vector<64x8xbf16>
    %11 = arith.truncf %0 : vector<8x128xf32> to vector<8x128xbf16>
    %cst_5 = arith.constant dense<0.000000e+00> : vector<64x128xf32>
    %12 = tpu.matmul %10, %11, %cst_5 {dimension_numbers = #tpu.dot_dimension_numbers<[1], [0], [0], [1], [0, 0, 1, 1], [], []>} : vector<64x8xbf16>, vector<8x128xbf16>, vector<64x128xf32> -> vector<64x128xf32>
    %13 = vector.extract_strided_slice %1 {offsets = [0, 0], sizes = [64, 1], strides = [1, 1]} : vector<64x8xf32> to vector<64x1xf32>
    %14 = vector.broadcast %13 : vector<64x1xf32> to vector<64x128xf32>
    %15 = vector.broadcast %9 : vector<1x128xf32> to vector<64x128xf32>
    %16 = arith.mulf %14, %15 : vector<64x128xf32>
    %17 = arith.addf %12, %16 : vector<64x128xf32>
    %18 = vector.extract_strided_slice %1 {offsets = [0, 1], sizes = [64, 1], strides = [1, 1]} : vector<64x8xf32> to vector<64x1xf32>
    %19 = vector.broadcast %18 : vector<64x1xf32> to vector<64x128xf32>
    %20 = arith.addf %17, %19 : vector<64x128xf32>
    %cst_6 = arith.constant 1.000000e-01 : f32
    %21 = vector.broadcast %cst_6 : f32 to vector<64x128xf32>
    %22 = arith.mulf %21, %20 : vector<64x128xf32>
    %23 = arith.maximumf %20, %22 : vector<64x128xf32>
    %24 = arith.truncf %23 : vector<64x128xf32> to vector<64x128xbf16>
    %c0_7 = arith.constant 0 : index
    %c0_8 = arith.constant 0 : index
    %25 = vector.load %arg3[%c0_7, %c0_8] : memref<128x64xbf16, #tpu.memory_space<vmem>>, vector<64x64xbf16>
    %26 = vector.extract_strided_slice %1 {offsets = [0, 2], sizes = [64, 1], strides = [1, 1]} : vector<64x8xf32> to vector<64x1xf32>
    %27 = arith.truncf %26 : vector<64x1xf32> to vector<64x1xbf16>
    %cst_9 = arith.constant dense<0.000000e+00> : vector<64x128xf32>
    %28 = tpu.matmul %25, %24, %cst_9 {dimension_numbers = #tpu.dot_dimension_numbers<[1], [0], [0], [1], [0, 0, 1, 1], [], []>} : vector<64x64xbf16>, vector<64x128xbf16>, vector<64x128xf32> -> vector<64x128xf32>
    %29 = arith.truncf %28 : vector<64x128xf32> to vector<64x128xbf16>
    %30 = vector.broadcast %27 : vector<64x1xbf16> to vector<64x128xbf16>
    %31 = arith.addf %29, %30 : vector<64x128xbf16>
    %cst_10 = arith.constant 1.000980e-01 : bf16
    %32 = vector.broadcast %cst_10 : bf16 to vector<64x128xbf16>
    %33 = arith.mulf %32, %31 : vector<64x128xbf16>
    %34 = arith.maximumf %31, %33 : vector<64x128xbf16>
    %c64 = arith.constant 64 : index
    %c0_11 = arith.constant 0 : index
    %35 = vector.load %arg3[%c64, %c0_11] : memref<128x64xbf16, #tpu.memory_space<vmem>>, vector<32x64xbf16>
    %36 = vector.extract_strided_slice %1 {offsets = [0, 3], sizes = [32, 1], strides = [1, 1]} : vector<64x8xf32> to vector<32x1xf32>
    %37 = arith.truncf %36 : vector<32x1xf32> to vector<32x1xbf16>
    %cst_12 = arith.constant dense<0.000000e+00> : vector<32x128xf32>
    %38 = tpu.matmul %35, %34, %cst_12 {dimension_numbers = #tpu.dot_dimension_numbers<[1], [0], [0], [1], [0, 0, 1, 1], [], []>} : vector<32x64xbf16>, vector<64x128xbf16>, vector<32x128xf32> -> vector<32x128xf32>
    %39 = arith.truncf %38 : vector<32x128xf32> to vector<32x128xbf16>
    %40 = vector.broadcast %37 : vector<32x1xbf16> to vector<32x128xbf16>
    %41 = arith.addf %39, %40 : vector<32x128xbf16>
    %cst_13 = arith.constant 1.000980e-01 : bf16
    %42 = vector.broadcast %cst_13 : bf16 to vector<32x128xbf16>
    %43 = arith.mulf %42, %41 : vector<32x128xbf16>
    %44 = arith.maximumf %41, %43 : vector<32x128xbf16>
    %c96 = arith.constant 96 : index
    %c0_14 = arith.constant 0 : index
    %45 = vector.load %arg3[%c96, %c0_14] : memref<128x64xbf16, #tpu.memory_space<vmem>>, vector<16x32xbf16>
    %46 = vector.extract_strided_slice %1 {offsets = [0, 4], sizes = [16, 1], strides = [1, 1]} : vector<64x8xf32> to vector<16x1xf32>
    %47 = arith.truncf %46 : vector<16x1xf32> to vector<16x1xbf16>
    %cst_15 = arith.constant dense<0.000000e+00> : vector<16x128xf32>
    %48 = tpu.matmul %45, %44, %cst_15 {dimension_numbers = #tpu.dot_dimension_numbers<[1], [0], [0], [1], [0, 0, 1, 1], [], []>} : vector<16x32xbf16>, vector<32x128xbf16>, vector<16x128xf32> -> vector<16x128xf32>
    %49 = arith.truncf %48 : vector<16x128xf32> to vector<16x128xbf16>
    %50 = vector.broadcast %47 : vector<16x1xbf16> to vector<16x128xbf16>
    %51 = arith.addf %49, %50 : vector<16x128xbf16>
    %cst_16 = arith.constant 1.000980e-01 : bf16
    %52 = vector.broadcast %cst_16 : bf16 to vector<16x128xbf16>
    %53 = arith.mulf %52, %51 : vector<16x128xbf16>
    %54 = arith.maximumf %51, %53 : vector<16x128xbf16>
    %c112 = arith.constant 112 : index
    %c0_17 = arith.constant 0 : index
    %55 = vector.load %arg3[%c112, %c0_17] : memref<128x64xbf16, #tpu.memory_space<vmem>>, vector<8x16xbf16>
    %56 = vector.extract_strided_slice %1 {offsets = [0, 5], sizes = [8, 1], strides = [1, 1]} : vector<64x8xf32> to vector<8x1xf32>
    %57 = arith.truncf %56 : vector<8x1xf32> to vector<8x1xbf16>
    %cst_18 = arith.constant dense<0.000000e+00> : vector<8x128xf32>
    %58 = tpu.matmul %55, %54, %cst_18 {dimension_numbers = #tpu.dot_dimension_numbers<[1], [0], [0], [1], [0, 0, 1, 1], [], []>} : vector<8x16xbf16>, vector<16x128xbf16>, vector<8x128xf32> -> vector<8x128xf32>
    %59 = arith.truncf %58 : vector<8x128xf32> to vector<8x128xbf16>
    %60 = vector.broadcast %57 : vector<8x1xbf16> to vector<8x128xbf16>
    %61 = arith.addf %59, %60 : vector<8x128xbf16>
    %cst_19 = arith.constant 1.000980e-01 : bf16
    %62 = vector.broadcast %cst_19 : bf16 to vector<8x128xbf16>
    %63 = arith.mulf %62, %61 : vector<8x128xbf16>
    %64 = arith.maximumf %61, %63 : vector<8x128xbf16>
    %c0_20 = arith.constant 0 : index
    %c0_21 = arith.constant 0 : index
    %65 = vector.load %arg4[%c0_20, %c0_21] : memref<2x8xbf16, #tpu.memory_space<vmem>>, vector<2x8xbf16>
    %cst_22 = arith.constant dense<0.000000e+00> : vector<2x128xf32>
    %66 = tpu.matmul %65, %64, %cst_22 {dimension_numbers = #tpu.dot_dimension_numbers<[1], [0], [0], [1], [0, 0, 1, 1], [], []>} : vector<2x8xbf16>, vector<8x128xbf16>, vector<2x128xf32> -> vector<2x128xf32>
    %67 = vector.extract_strided_slice %1 {offsets = [0, 6], sizes = [2, 1], strides = [1, 1]} : vector<64x8xf32> to vector<2x1xf32>
    %68 = vector.broadcast %67 : vector<2x1xf32> to vector<2x128xf32>
    %69 = arith.addf %66, %68 : vector<2x128xf32>
    %c0_23 = arith.constant 0 : index
    %c0_24 = arith.constant 0 : index
    %70 = vector.load %arg6[%c0_23, %c0_24] : memref<2x128xf32, #tpu.memory_space<vmem>>, vector<2x128xf32>
    tpu.vector_store %arg6[%c0_23, %c0_24], %69 {strides = array<i32>} : memref<2x128xf32, #tpu.memory_space<vmem>>, vector<2x128xf32>,
    return
  }
  func.func @transform_0(%arg0: i32) -> (i32, i32) {
    %c0_i32 = arith.constant 0 : i32
    %c0_i32_0 = arith.constant 0 : i32
    return %c0_i32, %arg0 : i32, i32
  }
  func.func @transform_1(%arg0: i32) -> (i32, i32) {
    %c0_i32 = arith.constant 0 : i32
    %c0_i32_0 = arith.constant 0 : i32
    %c0_i32_1 = arith.constant 0 : i32
    return %c0_i32, %c0_i32_0 : i32, i32
  }
  func.func @transform_2(%arg0: i32) -> (i32, i32) {
    %c0_i32 = arith.constant 0 : i32
    %c0_i32_0 = arith.constant 0 : i32
    %c0_i32_1 = arith.constant 0 : i32
    return %c0_i32, %c0_i32_0 : i32, i32
  }
  func.func @transform_3(%arg0: i32) -> (i32, i32) {
    %c0_i32 = arith.constant 0 : i32
    %c0_i32_0 = arith.constant 0 : i32
    %c0_i32_1 = arith.constant 0 : i32
    return %c0_i32, %c0_i32_0 : i32, i32
  }
  func.func @transform_4(%arg0: i32) -> (i32, i32) {
    %c0_i32 = arith.constant 0 : i32
    %c0_i32_0 = arith.constant 0 : i32
    %c0_i32_1 = arith.constant 0 : i32
    return %c0_i32, %c0_i32_0 : i32, i32
  }
  func.func @transform_5(%arg0: i32) -> (i32, i32) {
    %c0_i32 = arith.constant 0 : i32
    %c0_i32_0 = arith.constant 0 : i32
    return %c0_i32, %arg0 : i32, i32
  }
}

</mosaic_0001>

<bundles_post_ra>
// kernel: mst_edge_model_forward.1
= control target key start
LH: loop header
LB: loop body
LE: loop exit
PB: predicated region body
PF: predicated region fallthrough
CT: control target
= control target key end

     0   :  { %s1128_s18 = smov 0   ;;  %s1314_s0 = inlined_call_operand.vmem [shape: f32[8,256], index: 0, kind: input, shape index: {}]   ;;  %s1315_s1 = inlined_call_operand.vmem [shape: bf16[64,8], index: 1, kind: input, shape index: {}]   ;;  %s1316_s2 = inlined_call_operand.vmem [shape: bf16[128,64], index: 2, kind: input, shape index: {}]   ;;  %s1317_s3 = inlined_call_operand.vmem [shape: bf16[2,8], index: 3, kind: input, shape index: {}]   ;;  %s1318_s4 = inlined_call_operand.vmem [shape: f32[64,8], index: 4, kind: input, shape index: {}]   ;;  %s1319_s5 = inlined_call_operand.vmem [shape: f32[2,256], index: 5, kind: output, shape index: {}]  }
   0x1 LB: > { %s965_s19 = sadd.s32 4294967295, %s1088_s18   ;;  %p969_p0 = scmp.ge.s32.totalorder %s1088_s18, 1  ;;  %s1088_s18 = sphi %s1128_s18, %s15_s18  }
   0x2   : > { %p186_p1 = scmp.lt.s32.totalorder %s1088_s18, 3 }
   0x4   : > { %p187_p2 = pnand %p969_p0, %p186_p1 }
   0x5   : > { %p212_p3 = scmp.lt.s32.totalorder (!%p187_p2), %s965_s19, 1 }
   0x6   : > { %190 = sbr.rel (%p187_p2) target bundleno = 1052 (0x41c), region = 40 }
   0xb   : > { %v1139_v0 = vld [vmem:[%s1318_s4 + $0x30] sm:$0xff]  ;;  %v1144_v1 = vld [vmem:[%s1318_s4 + $0x20] sm:$0xff]  ;;  %v1090_v2 = vmov 0   ;;  %s1321_s19 = smov (!%p212_p3, %s965_s19), 1  ;;  %v1091_v3 = vmov 1   ;;  %vm348_vm0 = vcmask 1043456  }
   0xc   : > { %1063 = vset.pattern.permute.xlu1 %v1090_v2  ;;  %1062 = vset.pattern.permute.xlu0 %v1090_v2  ;;  %s970_s24 = sshll.u32 %s1321_s19, 3  ;;  %v1158_v5 = vld [vmem:[%s1318_s4 + $0x38] sm:$0xff]  ;;  %v1163_v6 = vld [vmem:[%s1318_s4 + $0x28] sm:$0xff]  ;;  %v1031_v9 = vld [vmem:[%s1315_s1] sm:$0xff]  ;;  %vm335_vm1 = vcmask 64512   ;;  %vm238_vm2 = vcmask 1042432  }
   0xd   : > { %299 = vperm.xlu0 %1062, %v1139_v0   ;;  %289 = vperm.xlu1 %1063, %v1144_v1   ;;  %s215_s27 = scalar_lea.vmem %s1314_s0, %s970_s24  ;;  %v1176_v10 = vld [vmem:[%s1318_s4 + $0x18] sm:$0xff]  ;;  %v1181_v11 = vld [vmem:[%s1318_s4 + $0x10] sm:$0xff]  ;;  %v1189_v12 = vld [vmem:[%s1318_s4] sm:$0xff]  ;;  %vm477_vm5 = vcmask 523264   ;;  %vm795_vm6 = vcmask 261120   ;;  %vm851_vm7 = vcmask 130048  }
   0xe   : > { %1064 = vset.pattern.permute.xlu2 %v1091_v3  ;;  %v221_v4 = vld [vmem:[%s215_s27] sm:$0xff]  ;;  %v1032_v13 = vld [vmem:[%s1315_s1 + $0x8] sm:$0xff]  ;;  %v1033_v15 = vld [vmem:[%s1315_s1 + $0x10] sm:$0xff]  ;;  %s971_s20 = sshll.u32 %s1321_s19, 1 }
   0xf   : > { %406 = vperm.xlu2 %1064, %v1139_v0   ;;  %v266_v7 = vpack.c.bf16 %v221_v4, %v221_v4  ;;  %v1199_v14 = vld [vmem:[%s1318_s4 + $0x8] sm:$0xff]  ;;  %v1034_v16 = vld [vmem:[%s1315_s1 + $0x18] sm:$0xff]  ;;  %v231_v17 = vrot.slane %v221_v4, 4  ;;  %s219_s23 = scalar_lea.vmem %s1319_s5, %s971_s20 }
  0x11   : > { %v350_v8 = vsel %vm348_vm0, %v266_v7, 0  ;;  %v233_v18 = vsub.f32 %v221_v4, %v231_v17  ;;  %v453_v17 = vpack.c.bf16 %v1144_v1, %v1144_v1 }
  0x12   : > { %359 = vmatpush.bf16.msra.mxu0 %v350_v8 }
  0x13   : > { %v234_v19 = vmul.f32 %v233_v18, %v233_v18 }
  0x15   : > { %304 = vperm.xlu0 %1062, %v1158_v5   ;;  %294 = vperm.xlu1 %1063, %v1163_v6   ;;  %v236_v20 = vrot.slane %v234_v19, 4 }
  0x16   : > { %988 = vmatmul.msk.bf16.vlgmr.msra.gmra.mxu0 %vm335_vm1, %v1031_v9 }
  0x17   : > { %410 = vperm.xlu2 %1064, %v1158_v5   ;;  %v239_v21 = vsel %vm238_vm2, %v236_v20, 0.0 }
  0x18   : > { %v240_v22 = vrot.slane %v239_v21, 4 }
  0x1a   : > { %v241_v23 = vadd.f32 %v240_v22, %v239_v21  ;;  %v1092_v21 = vmov 2  }
  0x1c   : > { %v242_v24 = vrot.slane %v241_v23, 2 }
  0x1d   : > { %284 = vperm.xlu1 %1063, %v1176_v10   ;;  %279 = vperm.xlu0 %1062, %v1181_v11  }
  0x1e   : > { %v243_v25 = vadd.f32 %v242_v24, %v241_v23 }
  0x1f   : > { %398 = vperm.xlu2 %1064, %v1144_v1   ;;  %v1225_v1 = vpack.c.bf16 %v1189_v12, %v1189_v12 }
  0x20   : > { %v244_v26 = vrot.slane %v243_v25, 1 }
  0x22   : > { %v245_v27 = vadd.f32 %v244_v26, %v243_v25 }
  0x24   : > { %1080 = vrsqrt.f32 %v245_v27  ;;  %vm253_vm3 = vcmp.eq.f32.partialorder %v245_v27, inf  ;;  %v256_v43 = vand.u32 2147483648, %v245_v27  ;;  %vm255_vm4 = vcmp.eq.f32.partialorder %v245_v27, 0.0 }
  0x25   : > { %1065 = vset.pattern.permute.xlu0 %v1091_v3  ;;  %269 = vperm.xlu1 %1063, %v1189_v12  }
  0x26   : > { %402 = vperm.xlu0 %1065, %v1163_v6   ;;  %989 = vmatmul.msk.bf16.gmra.mxu0 %vm335_vm1, %v1032_v13 }
  0x27   : > { %1066 = vset.pattern.permute.xlu2 %v1090_v2 }
  0x28   : > { %274 = vperm.xlu2 %1066, %v1199_v14  }
  0x2a   : > { %v1081_v28 = vpop.eup %1080 }
  0x2b   : > { %v247_v29 = vmul.f32 %v1081_v28, %v245_v27 }
  0x2d   : > { %1067 = vset.pattern.permute.xlu1 %v1091_v3  ;;  %v248_v30 = vmul.f32 %v1081_v28, %v247_v29 }
  0x2e   : > { %382 = vperm.xlu0 %1065, %v1189_v12   ;;  %390 = vperm.xlu1 %1067, %v1181_v11  }
  0x2f   : > { %v249_v33 = vmul.f32 0.5, %v248_v30 }
  0x30   : > { %1068 = vset.pattern.permute.xlu2 %v1091_v3 }
  0x31   : > { %394 = vperm.xlu2 %1068, %v1176_v10   ;;  %v250_v35 = vsub.f32 1.5, %v249_v33 }
  0x33   : > { %v251_v38 = vmul.f32 %v1081_v28, %v250_v35 }
  0x35   : > { %v252_v40 = vmul.f32 %v251_v38, %v245_v27 }
  0x36   : > { %386 = vperm.xlu1 %1067, %v1199_v14   ;;  %990 = vmatmul.msk.bf16.gmra.mxu0 %vm335_vm1, %v1033_v15 }
  0x37   : > { %v254_v44 = vsel %vm253_vm3, %v245_v27, %v252_v40  ;;  %1070 = vset.pattern.permute.xlu0 %v1092_v21 }
  0x38   : > { %v257_v45 = vsel %vm255_vm4, %v256_v43, %v254_v44 }
  0x39   : > { %1069 = vset.pattern.permute.xlu2 %v1092_v21 }
  0x3e   : > { %1071 = vset.pattern.permute.xlu1 %v1092_v21 }
  0x3f   : > { %565 = vperm.xlu1 %1071, %v453_v17  }
  0x46   : > { %991 = vmatmul.msk.bf16.gmra.mxu0 %vm335_vm1, %v1034_v16  ;;  %v456_v16 = vpack.c.bf16 %v1158_v5, %v1158_v5  ;;  %v1221_v5 = vpack.c.bf16 %v1181_v11, %v1181_v11 }
  0x48   : > { %592 = vperm.xlu0 %1070, %v456_v16   ;;  %547 = vperm.xlu1 %1071, %v1221_v5  }
  0x50   : > { %529 = vperm.xlu0 %1070, %v1225_v1  }
  0x69   : > { %v407_v34 = vpop.permute.xlu2 %406 }
  0x71   : > { %v411_v39 = vpop.permute.xlu2 %410 }
  0x79   : > { %v399_v46 = vpop.permute.xlu2 %398 }
  0x7f   : > { %v290_v31 = vpop.permute.xlu1 %289  ;;  %v300_v32 = vpop.permute.xlu0 %299 }
  0x80   : > { %v313_v15 = vmul.f32 %v300_v32, %v257_v45  ;;  %v311_v18 = vmul.f32 %v290_v31, %v257_v45 }
  0x82   : > { %v275_v53 = vpop.permute.xlu2 %274 }
  0x83   : > { %v308_v56 = vmul.f32 %v275_v53, %v257_v45  ;;  %v1035_v53 = vld [vmem:[%s1316_s2] sm:$0xff] }
  0x87   : > { %v295_v36 = vpop.permute.xlu1 %294  ;;  %v305_v37 = vpop.permute.xlu0 %304 }
  0x88   : > { %v312_v19 = vmul.f32 %v295_v36, %v257_v45  ;;  %v314_v24 = vmul.f32 %v305_v37, %v257_v45 }
  0x8b   : > { %v395_v32 = vpop.permute.xlu2 %394 }
  0x8f   : > { %v285_v41 = vpop.permute.xlu1 %284  ;;  %v280_v42 = vpop.permute.xlu0 %279 }
  0x90   : > { %v310_v22 = vmul.f32 %v285_v41, %v257_v45  ;;  %v309_v25 = vmul.f32 %v280_v42, %v257_v45 }
  0x93   : > { %v361_v47 = vpop.f32.mrf.mxu0 }
  0x97   : > { %v270_v48 = vpop.permute.xlu1 %269 }
  0x98   : > { %v307_v49 = vmul.f32 %v270_v48, %v257_v45  ;;  %v403_v50 = vpop.permute.xlu0 %402  ;;  %v1231_v48 = vpack.c.bf16 %v1199_v14, %v1199_v14  ;;  %v1038_v14 = vld [vmem:[%s1316_s2 + $0x18] sm:$0xff] }
  0x9a   : > { %v362_v51 = vadd.f32 %v361_v47, %v307_v49  ;;  %538 = vperm.xlu1 %1071, %v1231_v48  }
  0x9b   : > { %v363_v52 = vpop.f32.mrf.mxu0 }
  0x9c   : > { %v364_v59 = vadd.f32 %v363_v52, %v308_v56  ;;  %v1036_v56 = vld [vmem:[%s1316_s2 + $0x8] sm:$0xff] }
  0xa0   : > { %v391_v54 = vpop.permute.xlu1 %390  ;;  %v383_v55 = vpop.permute.xlu0 %382 }
  0xa1   : > { %v413_v57 = vadd.f32 %v383_v55, %v362_v51  ;;  %v454_v55 = vpack.c.bf16 %v1163_v6, %v1163_v6  ;;  %v1093_v6 = vmov 839922192  }
  0xa3   : > { %v366_v58 = vpop.f32.mrf.mxu0  ;;  %v421_v61 = vmul.f32 0.1, %v413_v57 }
  0xa4   : > { %v367_v33 = vadd.f32 %v366_v58, %v309_v25  ;;  %v533_v58 = vunpack.c.l.s4 %v1093_v6 }
  0xa5   : > { %v429_v2 = vmax.f32 %v413_v57, %v421_v61  ;;  %v1251_v57 = vpack.c.bf16 %v1176_v10, %v1176_v10 }
  0xa6   : > { %v415_v40 = vadd.f32 %v391_v54, %v367_v33  ;;  %v455_v54 = vpack.c.bf16 %v1139_v0, %v1139_v0  ;;  %v1037_v0 = vld [vmem:[%s1316_s2 + $0x10] sm:$0xff] }
  0xa8   : > { %v387_v60 = vpop.permute.xlu1 %386  ;;  %583 = vperm.xlu2 %1069, %v455_v54  }
  0xa9   : > { %v414_v62 = vadd.f32 %v387_v60, %v364_v59  ;;  %v1261_v60 = vunpack.c.0.s8 %v533_v58 }
  0xab   : > { %v422_v63 = vmul.f32 0.1, %v414_v62  ;;  %v368_v4 = vpop.f32.mrf.mxu0 }
  0xac   : > { %v369_v29 = vadd.f32 %v368_v4, %v310_v22 }
  0xad   : > { %v430_v3 = vmax.f32 %v414_v62, %v422_v63 }
  0xaf   : > { %v437_v7 = vpack.c.bf16 %v430_v3, %v429_v2 }
  0xb0   : > { %574 = vperm.xlu2 %1069, %v454_v55  }
  0xb3   : > { %v371_v8 = vpop.f32.mrf.mxu0 }
  0xb4   : > { %v372_v26 = vadd.f32 %v371_v8, %v311_v18 }
  0xb6   : > { %v417_v35 = vadd.f32 %v399_v46, %v372_v26  ;;  %v423_v46 = vmul.f32 0.1, %v415_v40 }
  0xb8   : > { %v425_v41 = vmul.f32 0.1, %v417_v35  ;;  %v431_v51 = vmax.f32 %v415_v40, %v423_v46  ;;  %556 = vperm.xlu2 %1069, %v1251_v57  }
  0xbb   : > { %v373_v9 = vpop.f32.mrf.mxu0 }
  0xbc   : > { %v374_v23 = vadd.f32 %v373_v9, %v312_v19  ;;  %v566_v9 = vpop.permute.xlu1 %565 }
  0xbd   : > { %v571_v33 = vperm.slane %v566_v9, %v1261_v60 }
  0xbe   : > { %v418_v30 = vadd.f32 %v403_v50, %v374_v23 }
  0xc0   : > { %v426_v38 = vmul.f32 0.1, %v418_v30 }
  0xc2   : > { %v434_v47 = vmax.f32 %v418_v30, %v426_v38 }
  0xc3   : > { %v376_v13 = vpop.f32.mrf.mxu0 }
  0xc4   : > { %v377_v20 = vadd.f32 %v376_v13, %v313_v15 }
  0xc6   : > { %v419_v27 = vadd.f32 %v407_v34, %v377_v20  ;;  %v416_v34 = vadd.f32 %v395_v32, %v369_v29 }
  0xc8   : > { %v427_v36 = vmul.f32 0.1, %v419_v27  ;;  %v424_v44 = vmul.f32 0.1, %v416_v34 }
  0xca   : > { %v435_v42 = vmax.f32 %v419_v27, %v427_v36  ;;  %v432_v49 = vmax.f32 %v416_v34, %v424_v44 }
  0xcb   : > { %v378_v28 = vpop.f32.mrf.mxu0 }
  0xcc   : > { %v379_v31 = vadd.f32 %v378_v28, %v314_v24  ;;  %v438_v52 = vpack.c.bf16 %v432_v49, %v431_v51  ;;  %v548_v24 = vpop.permute.xlu1 %547 }
  0xcd   : > { %v553_v40 = vperm.slane %v548_v24, %v1261_v60 }
  0xce   : > { %v420_v37 = vadd.f32 %v411_v39, %v379_v31  ;;  %v433_v39 = vmax.f32 %v417_v35, %v425_v41 }
  0xd0   : > { %v428_v11 = vmul.f32 0.1, %v420_v37  ;;  %v439_v50 = vpack.c.bf16 %v434_v47, %v433_v39 }
  0xd2   : > { %v436_v43 = vmax.f32 %v420_v37, %v428_v11  ;;  %v611_v11 = vunpack.c.l.bf16 %v571_v33 }
  0xd4   : > { %v440_v45 = vpack.c.bf16 %v436_v43, %v435_v42 }
  0xd6   : > { %494 = vmatpush.bf16.msra.mxu1 %v440_v45  ;;  %1042 = vmatpush.bf16.msra.mxu2 %v440_v45 }
  0xda   : > { %495 = vmatpush.bf16.msra.mxu1 %v439_v50  ;;  %1043 = vmatpush.bf16.msra.mxu2 %v439_v50  ;;  %v609_v50 = vunpack.c.l.bf16 %v553_v40 }
  0xde   : > { %496 = vmatpush.bf16.msra.mxu1 %v438_v52  ;;  %1044 = vmatpush.bf16.msra.mxu2 %v438_v52 }
  0xe2   : > { %497 = vmatpush.bf16.msra.mxu1 %v437_v7  ;;  %1045 = vmatpush.bf16.msra.mxu2 %v437_v7  ;;  %v593_v7 = vpop.permute.xlu0 %592 }
  0xe3   : > { %v598_v8 = vperm.slane %v593_v7, %v1261_v60 }
  0xe5   : > { %1008 = vmatmul.msk.bf16.vlgmr.msra.gmra.mxu1 %vm477_vm5, %v1035_v53  ;;  %1011 = vmatmul.msk.bf16.vlgmr.msra.gmra.mxu2 %vm477_vm5, %v1038_v14  ;;  %v614_v17 = vunpack.c.l.bf16 %v598_v8  ;;  %v1094_v14 = vmov 3  }
  0xe6   : > { %1074 = vset.pattern.permute.xlu1 %v1094_v14  ;;  %1072 = vset.pattern.permute.xlu2 %v1094_v14 }
  0xe7   : > { %719 = vperm.xlu1 %1074, %v1225_v1   ;;  %1073 = vset.pattern.permute.xlu0 %v1094_v14 }
  0xe8   : > { %735 = vperm.xlu2 %1072, %v1221_v5   ;;  %743 = vperm.xlu0 %1073, %v1251_v57  }
  0xea   : > { %v530_v41 = vpop.permute.xlu0 %529 }
  0xeb   : > { %v535_v49 = vperm.slane %v530_v41, %v1261_v60 }
  0xed   : > { %v607_v6 = vunpack.c.l.bf16 %v535_v49 }
  0xf0   : > { %727 = vperm.xlu2 %1072, %v1231_v48  }
  0xf5   : > { %1009 = vmatmul.msk.bf16.gmra.mxu1 %vm477_vm5, %v1036_v56 }
 0x102   : > { %v584_v61 = vpop.permute.xlu2 %583 }
 0x103   : > { %v589_v10 = vperm.slane %v584_v61, %v1261_v60 }
 0x105   : > { %1010 = vmatmul.msk.bf16.gmra.mxu1 %vm477_vm5, %v1037_v0  ;;  %v613_v63 = vunpack.c.l.bf16 %v589_v10 }
 0x10a   : > { %v575_v22 = vpop.permute.xlu2 %574 }
 0x10b   : > { %v580_v56 = vperm.slane %v575_v22, %v1261_v60 }
 0x10c   : > { %v539_v36 = vpop.permute.xlu1 %538 }
 0x10d   : > { %v544_v44 = vperm.slane %v539_v36, %v1261_v60 }
 0x10f   : > { %v608_v54 = vunpack.c.l.bf16 %v544_v44 }
 0x112   : > { %v557_v32 = vpop.permute.xlu2 %556 }
 0x113   : > { %v562_v37 = vperm.slane %v557_v32, %v1261_v60 }
 0x115   : > { %v610_v47 = vunpack.c.l.bf16 %v562_v37  ;;  %v1039_v37 = vld [vmem:[%s1316_s2 + $0x20] sm:$0xff] }
 0x162   : > { %v1259_v59 = vpop.f32.mrf.mxu1 }
 0x163   : > { %v519_v51 = vpack.c.bf16 %v1259_v59, %v1259_v59 }
 0x165   : > { %v599_v59 = vunpack.c.l.bf16 %v519_v51  ;;  %v1095_v51 = vmov 4  }
 0x166   : > { %1075 = vset.pattern.permute.xlu1 %v1095_v51  ;;  %1076 = vset.pattern.permute.xlu2 %v1095_v51 }
 0x167   : > { %v615_v7 = vadd.f32 %v607_v6, %v599_v59  ;;  %816 = vperm.xlu1 %1075, %v1225_v1   ;;  %824 = vperm.xlu2 %1076, %v1231_v48  }
 0x168   : > { %v514_v62 = vpop.f32.mrf.mxu2 }
 0x169   : > { %v525_v2 = vpack.c.bf16 %v514_v62, %v514_v62  ;;  %v623_v5 = vpack.c.bf16 %v615_v7, %v615_v7 }
 0x16a   : > { %v501_v3 = vpop.f32.mrf.mxu1 }
 0x16b   : > { %v605_v4 = vunpack.c.l.bf16 %v525_v2  ;;  %v520_v45 = vpack.c.bf16 %v501_v3, %v501_v3  ;;  %v612_v2 = vunpack.c.l.bf16 %v580_v56 }
 0x16d   : > { %v621_v13 = vadd.f32 %v613_v63, %v605_v4  ;;  %v600_v55 = vunpack.c.l.bf16 %v520_v45 }
 0x16f   : > { %v629_v15 = vpack.c.bf16 %v621_v13, %v621_v13  ;;  %v616_v63 = vadd.f32 %v608_v54, %v600_v55 }
 0x170   : > { %v516_v16 = vpop.f32.mrf.mxu2 }
 0x171   : > { %v526_v18 = vpack.c.bf16 %v516_v16, %v516_v16  ;;  %v637_v20 = vunpack.c.l.bf16 %v629_v15  ;;  %v624_v15 = vpack.c.bf16 %v616_v63, %v616_v63 }
 0x172   : > { %v504_v19 = vpop.f32.mrf.mxu1 }
 0x173   : > { %v606_v21 = vunpack.c.l.bf16 %v526_v18  ;;  %v645_v26 = vmul.f32 0.100097656, %v637_v20  ;;  %v521_v42 = vpack.c.bf16 %v504_v19, %v504_v19 }
 0x175   : > { %v622_v23 = vadd.f32 %v614_v17, %v606_v21  ;;  %v669_v30 = vmax.f32 %v637_v20, %v645_v26  ;;  %v601_v52 = vunpack.c.l.bf16 %v521_v42  ;;  %v632_v20 = vunpack.c.l.bf16 %v624_v15 }
 0x177   : > { %v630_v25 = vpack.c.bf16 %v622_v23, %v622_v23  ;;  %v617_v61 = vadd.f32 %v609_v50, %v601_v52  ;;  %v631_v23 = vunpack.c.l.bf16 %v623_v5  ;;  %v744_v52 = vpop.permute.xlu0 %743 }
 0x178   : > { %v749_v6 = vperm.slane %v744_v52, %v1261_v60 }
 0x179   : > { %v638_v27 = vunpack.c.l.bf16 %v630_v25  ;;  %v625_v8 = vpack.c.bf16 %v617_v61, %v617_v61 }
 0x17a   : > { %v506_v28 = vpop.f32.mrf.mxu1 }
 0x17b   : > { %v646_v29 = vmul.f32 0.100097656, %v638_v27  ;;  %v522_v34 = vpack.c.bf16 %v506_v28, %v506_v28  ;;  %v633_v57 = vunpack.c.l.bf16 %v625_v8 }
 0x17d   : > { %v670_v31 = vmax.f32 %v638_v27, %v646_v29  ;;  %v602_v46 = vunpack.c.l.bf16 %v522_v34  ;;  %v641_v26 = vmul.f32 0.100097656, %v633_v57  ;;  %v640_v29 = vmul.f32 0.100097656, %v632_v20  ;;  %v1040_v34 = vld [vmem:[%s1316_s2 + $0x28] sm:$0xff] }
 0x17f   : > { %v674_v35 = vpack.c.bf16 %v670_v31, %v669_v30  ;;  %v618_v0 = vadd.f32 %v610_v47, %v602_v46  ;;  %v665_v30 = vmax.f32 %v633_v57, %v641_v26  ;;  %v639_v31 = vmul.f32 0.100097656, %v631_v23 }
 0x180   : > { %v664_v33 = vmax.f32 %v632_v20, %v640_v29 }
 0x181   : > { %699 = vmatpush.bf16.msrb.mxu2 %v674_v35  ;;  %v626_v3 = vpack.c.bf16 %v618_v0, %v618_v0  ;;  %v663_v35 = vmax.f32 %v631_v23, %v639_v31 }
 0x182   : > { %v509_v38 = vpop.f32.mrf.mxu1 }
 0x183   : > { %v523_v43 = vpack.c.bf16 %v509_v38, %v509_v38  ;;  %v634_v16 = vunpack.c.l.bf16 %v626_v3  ;;  %v671_v36 = vpack.c.bf16 %v664_v33, %v663_v35 }
 0x185   : > { %v603_v39 = vunpack.c.l.bf16 %v523_v43  ;;  %v642_v22 = vmul.f32 0.100097656, %v634_v16  ;;  %v720_v43 = vpop.permute.xlu1 %719 }
 0x187   : > { %v619_v53 = vadd.f32 %v611_v11, %v603_v39  ;;  %v666_v28 = vmax.f32 %v634_v16, %v642_v22  ;;  %v736_v11 = vpop.permute.xlu2 %735  ;;  %v725_v39 = vperm.slane %v720_v43, %v1261_v60 }
 0x188   : > { %v741_v42 = vperm.slane %v736_v11, %v1261_v60 }
 0x189   : > { %v627_v10 = vpack.c.bf16 %v619_v53, %v619_v53  ;;  %v672_v32 = vpack.c.bf16 %v666_v28, %v665_v30  ;;  %v754_v55 = vunpack.c.l.bf16 %v725_v39  ;;  %v850_v39 = vld [vmem:[%s1316_s2 + $0x38] sm:$0xf] }
 0x18a   : > { %v511_v58 = vpop.f32.mrf.mxu1  ;;  %v756_v46 = vunpack.c.l.bf16 %v741_v42 }
 0x18b   : > { %v524_v62 = vpack.c.bf16 %v511_v58, %v511_v58  ;;  %v635_v9 = vunpack.c.l.bf16 %v627_v10 }
 0x18d   : > { %v604_v4 = vunpack.c.l.bf16 %v524_v62  ;;  %v643_v19 = vmul.f32 0.100097656, %v635_v9  ;;  %v757_v62 = vunpack.c.l.bf16 %v749_v6 }
 0x18f   : > { %v620_v13 = vadd.f32 %v612_v2, %v604_v4  ;;  %v667_v24 = vmax.f32 %v635_v9, %v643_v19  ;;  %v728_v41 = vpop.permute.xlu2 %727 }
 0x190   : > { %v733_v44 = vperm.slane %v728_v41, %v1261_v60 }
 0x191   : > { %v628_v17 = vpack.c.bf16 %v620_v13, %v620_v13 }
 0x192   : > { %v755_v53 = vunpack.c.l.bf16 %v733_v44 }
 0x193   : > { %v636_v18 = vunpack.c.l.bf16 %v628_v17 }
 0x195   : > { %v644_v21 = vmul.f32 0.100097656, %v636_v18 }
 0x197   : > { %v668_v25 = vmax.f32 %v636_v18, %v644_v21 }
 0x199   : > { %v673_v27 = vpack.c.bf16 %v668_v25, %v667_v24  ;;  %v1041_v24 = vld [vmem:[%s1316_s2 + $0x30] sm:$0xff] }
 0x19b   : > { %700 = vmatpush.bf16.msrb.mxu2 %v673_v27  ;;  %v1096_v27 = vmov 5  }
 0x19c   : > { %1077 = vset.pattern.permute.xlu0 %v1096_v27 }
 0x19d   : > { %870 = vperm.xlu0 %1077, %v1225_v1  }
 0x19f   : > { %701 = vmatpush.bf16.msrb.mxu2 %v672_v32 }
 0x1a3   : > { %702 = vmatpush.bf16.msrb.mxu2 %v671_v36 }
 0x1a6   : > { %1020 = vmatmul.msk.bf16.vlgmr.msrb.gmra.mxu2 %vm477_vm5, %v1039_v37 }
 0x1b6   : > { %1021 = vmatmul.msk.bf16.gmra.mxu2 %vm477_vm5, %v1040_v34 }
 0x1c1   : > { %v825_v31 = vpop.permute.xlu2 %824 }
 0x1c2   : > { %v830_v35 = vperm.slane %v825_v31, %v1261_v60 }
 0x1c4   : > { %v834_v34 = vunpack.c.l.bf16 %v830_v35 }
 0x1d9   : > { %v817_v25 = vpop.permute.xlu1 %816 }
 0x1da   : > { %v822_v26 = vperm.slane %v817_v25, %v1261_v60 }
 0x1dc   : > { %v833_v29 = vunpack.c.l.bf16 %v822_v26 }
 0x229   : > { %v704_v38 = vpop.f32.mrf.mxu2 }
 0x22a   : > { %v714_v49 = vpack.c.bf16 %v704_v38, %v704_v38 }
 0x22c   : > { %v750_v56 = vunpack.c.l.bf16 %v714_v49  ;;  %v1097_v49 = vmov 6  }
 0x22d   : > { %1078 = vset.pattern.permute.xlu1 %v1097_v49  ;;  %1079 = vset.pattern.permute.xlu0 %v1097_v49 }
 0x22e   : > { %v758_v61 = vadd.f32 %v754_v55, %v750_v56  ;;  %889 = vperm.xlu1 %1078, %v1189_v12   ;;  %v887_v12 = vld [vmem:[%s1317_s3] sm:$0x1] }
 0x230   : > { %v762_v4 = vpack.c.bf16 %v758_v61, %v758_v61 }
 0x231   : > { %v706_v40 = vpop.f32.mrf.mxu2 }
 0x232   : > { %v715_v45 = vpack.c.bf16 %v706_v40, %v706_v40  ;;  %v766_v13 = vunpack.c.l.bf16 %v762_v4 }
 0x234   : > { %v751_v14 = vunpack.c.l.bf16 %v715_v45  ;;  %v770_v19 = vmul.f32 0.100097656, %v766_v13 }
 0x236   : > { %v759_v58 = vadd.f32 %v755_v53, %v751_v14  ;;  %v782_v22 = vmax.f32 %v766_v13, %v770_v19 }
 0x238   : > { %v763_v2 = vpack.c.bf16 %v759_v58, %v759_v58 }
 0x239   : > { %v709_v47 = vpop.f32.mrf.mxu2 }
 0x23a   : > { %v716_v50 = vpack.c.bf16 %v709_v47, %v709_v47  ;;  %v767_v48 = vunpack.c.l.bf16 %v763_v2 }
 0x23c   : > { %v752_v54 = vunpack.c.l.bf16 %v716_v50  ;;  %v771_v5 = vmul.f32 0.100097656, %v767_v48  ;;  %v871_v50 = vpop.permute.xlu0 %870 }
 0x23d   : > { %v876_v51 = vperm.slane %v871_v50, %v1261_v60 }
 0x23e   : > { %v760_v0 = vadd.f32 %v756_v46, %v752_v54  ;;  %v783_v21 = vmax.f32 %v767_v48, %v771_v5 }
 0x23f   : > { %v878_v53 = vunpack.c.l.bf16 %v876_v51 }
 0x240   : > { %v764_v10 = vpack.c.bf16 %v760_v0, %v760_v0  ;;  %v786_v23 = vpack.c.bf16 %v783_v21, %v782_v22 }
 0x241   : > { %v711_v59 = vpop.f32.mrf.mxu2 }
 0x242   : > { %v717_v63 = vpack.c.bf16 %v711_v59, %v711_v59  ;;  %v768_v8 = vunpack.c.l.bf16 %v764_v10 }
 0x244   : > { %v753_v3 = vunpack.c.l.bf16 %v717_v63  ;;  %v772_v16 = vmul.f32 0.100097656, %v768_v8 }
 0x246   : > { %v761_v7 = vadd.f32 %v757_v62, %v753_v3  ;;  %v784_v57 = vmax.f32 %v768_v8, %v772_v16 }
 0x248   : > { %v765_v9 = vpack.c.bf16 %v761_v7, %v761_v7 }
 0x24a   : > { %v769_v15 = vunpack.c.l.bf16 %v765_v9 }
 0x24c   : > { %v773_v17 = vmul.f32 0.100097656, %v769_v15 }
 0x24e   : > { %v785_v18 = vmax.f32 %v769_v15, %v773_v17 }
 0x250   : > { %v787_v20 = vpack.c.bf16 %v785_v18, %v784_v57 }
 0x252   : > { %805 = vmatpush.bf16.msra.mxu3 %v787_v20 }
 0x256   : > { %806 = vmatpush.bf16.msra.mxu3 %v786_v23 }
 0x259   : > { %1026 = vmatmul.msk.bf16.vlgmr.msra.gmra.mxu3 %vm795_vm6, %v1041_v24 }
 0x2a0   : > { %v890_v60 = vpop.permute.xlu1 %889 }
 0x2dc   : > { %v808_v28 = vpop.f32.mrf.mxu3 }
 0x2dd   : > { %v813_v30 = vpack.c.bf16 %v808_v28, %v808_v28 }
 0x2df   : > { %v831_v32 = vunpack.c.l.bf16 %v813_v30 }
 0x2e1   : > { %v835_v33 = vadd.f32 %v833_v29, %v831_v32 }
 0x2e3   : > { %v837_v37 = vpack.c.bf16 %v835_v33, %v835_v33 }
 0x2e4   : > { %v810_v36 = vpop.f32.mrf.mxu3 }
 0x2e5   : > { %v814_v38 = vpack.c.bf16 %v810_v36, %v810_v36  ;;  %v839_v40 = vunpack.c.l.bf16 %v837_v37 }
 0x2e7   : > { %v832_v11 = vunpack.c.l.bf16 %v814_v38  ;;  %v841_v44 = vmul.f32 0.100097656, %v839_v40 }
 0x2e9   : > { %v836_v41 = vadd.f32 %v834_v34, %v832_v11  ;;  %v847_v1 = vmax.f32 %v839_v40, %v841_v44 }
 0x2eb   : > { %v838_v42 = vpack.c.bf16 %v836_v41, %v836_v41 }
 0x2ed   : > { %v840_v43 = vunpack.c.l.bf16 %v838_v42 }
 0x2ef   : > { %v842_v45 = vmul.f32 0.100097656, %v840_v43 }
 0x2f1   : > { %v848_v47 = vmax.f32 %v840_v43, %v842_v45 }
 0x2f3   : > { %v849_v46 = vpack.c.bf16 %v848_v47, %v847_v1 }
 0x2f5   : > { %862 = vmatpush.bf16.msrb.mxu3 %v849_v46 }
 0x2f8   : > { %1027 = vmatmul.msk.bf16.vlgmr.msrb.gmra.mxu3 %vm851_vm7, %v850_v39 }
 0x37b   : > { %v864_v52 = vpop.f32.mrf.mxu3 }
 0x37c   : > { %v868_v14 = vpack.c.bf16 %v864_v52, %v864_v52 }
 0x37e   : > { %v877_v54 = vunpack.c.l.bf16 %v868_v14 }
 0x380   : > { %v879_v55 = vadd.f32 %v878_v53, %v877_v54 }
 0x382   : > { %v880_v56 = vpack.c.bf16 %v879_v55, %v879_v55 }
 0x383   : > { %v866_v0 = vpop.f32.mrf.mxu3 }
 0x384   : > { %v881_v6 = vunpack.c.l.bf16 %v880_v56 }
 0x386   : > { %v882_v58 = vmul.f32 0.100097656, %v881_v6 }
 0x388   : > { %v885_v59 = vmax.f32 %v881_v6, %v882_v58 }
 0x38a   : > { %v886_v61 = vpack.c.bf16 %v885_v59, %v885_v59 }
 0x38c   : > { %v896_v10 = vsel %vm348_vm0, %v886_v61, 0 }
 0x38d   : > { %905 = vmatpush.bf16.msra.mxu3 %v896_v10 }
 0x390   : > { %1028 = vmatmul.msk.bf16.vlgmr.msra.gmra.mxu3 %vm335_vm1, %v887_v12 }
 0x413   : > { %v907_v62 = vpop.f32.mrf.mxu3 }
 0x414   : > { %v908_v63 = vadd.f32 %v907_v62, %v890_v60 }
 0x416   : > { %911 = vst [vmem:[%s219_s23] sm:$0x3] %v908_v63 }
 0x41b   : > { %v909_v2 = vpop.f32.mrf.mxu3 }
 0x41c PF: > { %s15_s18 = sadd.s32 1, %s1088_s18  }
 0x41d   : > { %p12_p4 = scmp.ge.s32.totalorder %s15_s18, 4  }
 0x41f   :  { %14 = sbr.rel (!%p12_p4) target bundleno = 1 (0x1), region = 70 }

</bundles_post_ra>
